<compile_context>
chip_gen: v6e
topology: v6e:2x2x1
jax: 0.10.0
libtpu: 0.0.40
codegen_flags: <defaults>
</compile_context>

<pallas_src>
import jax
import jax.numpy as jnp
from jax.experimental import pallas as pl
from jax.experimental.pallas import tpu as pltpu

_LANE = 128
_SUBLANE = 8


def _round_up(x, m):
    return (x + m - 1) // m * m


def _chip_prefers_256():
    """v6e / v7x MXUs are 256 wide; odd 128-multiples half-fill a pass."""
    try:
        kind = jax.devices()[0].device_kind.lower()
        return ("v6" in kind) or ("v7" in kind)
    except Exception:
        return False


def _vmem_capacity_bytes():
    """Per-TensorCore VMEM capacity, with conservative fallbacks."""
    try:
        return int(pltpu.get_tpu_info().vmem_capacity_bytes)
    except Exception:
        pass
    try:
        kind = jax.devices()[0].device_kind.lower()
        if "v7" in kind:
            return 64 << 20
        return 128 << 20
    except Exception:
        return 64 << 20  # safe on every generation


def _align_feature(n, prefer_256):
    p = _round_up(max(int(n), 1), _LANE)
    # On 256-wide MXUs, bumping odd 128-multiples (>=384) to a 256 multiple
    # costs no extra real work (the half-empty pass happens anyway).
    if prefer_256 and p >= 384 and p % 256 != 0:
        p = _round_up(p, 256)
    return p


def _fused_mlp_kernel(x_ref,
                      w1_ref, s1_ref,
                      w2_ref, s2_ref,
                      w3_ref, s3_ref,
                      w4_ref, s4_ref,
                      out_ref):
    """One batch tile of the fused eval-mode 4-layer MLP.

    Per layer: h = relu(h @ W' + shift), where
      W'    = W^T * (gamma / sqrt(running_var + eps))   (bf16, pre-padded)
      shift = (bias - running_mean) * scale + beta      (f32, shape (1, out))
    Dropout is identity in eval mode.  Matmul inputs are bf16, the MXU
    accumulates in f32 (preferred_element_type); bias-add/relu run in f32 and
    the inter-layer activation is carried in bf16 to halve vreg/VMEM pressure.
    """
    def layer(h_bf16, w_ref, s_ref):
        z = jnp.dot(h_bf16, w_ref[...], preferred_element_type=jnp.float32)
        return jnp.maximum(z + s_ref[...], 0.0)

    h = x_ref[...].astype(jnp.bfloat16)
    h = layer(h, w1_ref, s1_ref).astype(jnp.bfloat16)
    h = layer(h, w2_ref, s2_ref).astype(jnp.bfloat16)
    h = layer(h, w3_ref, s3_ref).astype(jnp.bfloat16)
    h = layer(h, w4_ref, s4_ref)                 # final layer stays f32
    out_ref[...] = h.astype(out_ref.dtype)


def _build_call(TB, Rp, Hp, Vp, n_tiles, Bp, vmem_limit, flops,
                bytes_accessed, single_buffer_weights):
    def resident(shape):
        # Constant index_map => weights stay in VMEM across grid steps;
        # Buffered(1) additionally drops the second pipeline copy.
        if single_buffer_weights:
            return pl.BlockSpec(shape, lambda i: (0, 0),
                                pipeline_mode=pl.Buffered(1))
        return pl.BlockSpec(shape, lambda i: (0, 0))

    return pl.pallas_call(
        _fused_mlp_kernel,
        out_shape=jax.ShapeDtypeStruct((Bp, Vp), jnp.float32),
        grid=(n_tiles,),
        in_specs=[
            pl.BlockSpec((TB, Rp), lambda i: (i, 0)),   # streamed x tile
            resident((Rp, Hp)), resident((1, Hp)),
            resident((Hp, Hp)), resident((1, Hp)),
            resident((Hp, Hp)), resident((1, Hp)),
            resident((Hp, Vp)), resident((1, Vp)),
        ],
        out_specs=pl.BlockSpec((TB, Vp), lambda i: (i, 0)),
        compiler_params=pltpu.CompilerParams(
            dimension_semantics=("parallel",),
            vmem_limit_bytes=vmem_limit),
        cost_estimate=pl.CostEstimate(
            flops=flops, transcendentals=0, bytes_accessed=bytes_accessed),
    )


def att_mlp_forward(features, params):
    """features: (B, C, H, W) or (B, F). params: output of make_params()."""
    B = features.shape[0]
    # Same row-major flatten as torch `features.view(B, -1)`.
    x = features.reshape(B, -1).astype(jnp.float32)
    R, H, V = params["dims"]
    Rp, Hp, Vp = params["padded_dims"]
    if x.shape[1] != R:
        raise ValueError(f"expected {R} input features, got {x.shape[1]}")

    cap = _vmem_capacity_bytes()

    # Batch tiling: MXU-sized tiles for real batches, >= 2 grid steps whenever
    # the batch allows it (v7x 2-TC split), whole sublane-padded batch for tiny
    # demo batches.
    Bp8 = _round_up(B, _SUBLANE)
    if Bp8 >= 1024 and cap >= (96 << 20):
        TB = 512                                   # big DMAs on v5e/v6e VMEM
    elif Bp8 >= 512:
        TB = 256
    elif Bp8 >= 256:
        TB = 128
    elif Bp8 >= 128:
        TB = _round_up(Bp8 // 2, _SUBLANE)         # guarantee >= 2 grid steps
    else:
        TB = Bp8
    Bp = _round_up(Bp8, TB)
    n_tiles = Bp // TB

    # Only the activation is padded per call (weights were pre-padded once in
    # make_params).  Zero K-columns of x are exact: the matching W' rows are
    # zero, so padded lanes contribute nothing.
    xp = jnp.pad(x, ((0, Bp - B), (0, Rp - R)))

    w1, s1 = params["w1"], params["s1"]
    w2, s2 = params["w2"], params["s2"]
    w3, s3 = params["w3"], params["s3"]
    w4, s4 = params["w4"], params["s4"]

    # VMEM budget: single-buffered bf16 weights + f32 shifts, double-buffered
    # streamed x/out tiles, in-flight activations, plus headroom; capped at
    # ~80% of physical per-TC VMEM.
    weight_bytes = 2 * (Rp * Hp + 2 * Hp * Hp + Hp * Vp) + 4 * (3 * Hp + Vp)
    stream_bytes = 2 * 4 * TB * (Rp + Vp)
    act_bytes = 4 * TB * Hp * 3
    vmem_limit = int(1.25 * (weight_bytes + stream_bytes + act_bytes)) + (4 << 20)
    vmem_limit = max(vmem_limit, 16 << 20)
    vmem_limit = min(vmem_limit, int(0.8 * cap))

    flops = 2 * Bp * (Rp * Hp + 2 * Hp * Hp + Hp * Vp)
    bytes_accessed = weight_bytes + 4 * Bp * (Rp + Vp)

    args = (xp, w1, s1, w2, s2, w3, s3, w4, s4)
    try:
        out = _build_call(TB, Rp, Hp, Vp, n_tiles, Bp, vmem_limit, flops,
                          bytes_accessed, single_buffer_weights=True)(*args)
    except Exception:
        # Fallback if pl.Buffered(1) is rejected by this jax/libtpu build.
        out = _build_call(TB, Rp, Hp, Vp, n_tiles, Bp, vmem_limit, flops,
                          bytes_accessed, single_buffer_weights=False)(*args)

    # Slice away batch / lane padding.
    return out[:B, :V]


def _fold_layer(key, in_f, out_f, eps=1e-5):
    """Deterministic init mimicking Linear + BatchNorm1d (eval), folded into
    (W' = W^T * scale, shift) with shift of shape (1, out_f)."""
    k_w, k_b, k_g, k_beta, k_rm, k_rv = jax.random.split(key, 6)
    bound = 1.0 / jnp.sqrt(in_f)
    w = jax.random.uniform(k_w, (out_f, in_f), jnp.float32, -bound, bound)
    b = jax.random.uniform(k_b, (out_f,), jnp.float32, -bound, bound)
    gamma = jax.random.uniform(k_g, (out_f,), jnp.float32, 0.5, 1.5)
    beta = jax.random.uniform(k_beta, (out_f,), jnp.float32, -0.5, 0.5)
    running_mean = jax.random.uniform(k_rm, (out_f,), jnp.float32, -0.1, 0.1)
    running_var = jax.random.uniform(k_rv, (out_f,), jnp.float32, 0.8, 1.2)

    scale = gamma / jnp.sqrt(running_var + eps)
    w_folded = w.T * scale[None, :]                        # (in_f, out_f)
    shift = ((b - running_mean) * scale + beta)[None, :]   # (1, out_f)
    return w_folded, shift


def make_params(resnet_out_size, hidden_size, vocab_size, seed=42):
    """Folded eval-mode params, pre-padded to lane multiples and cast to bf16
    ONCE here so the per-call wrapper does no weight copies."""
    prefer_256 = _chip_prefers_256()
    Rp = _align_feature(resnet_out_size, prefer_256)
    Hp = _align_feature(hidden_size, prefer_256)
    Vp = _align_feature(vocab_size, prefer_256)

    keys = jax.random.split(jax.random.PRNGKey(seed), 4)
    w1, s1 = _fold_layer(keys[0], resnet_out_size, hidden_size)
    w2, s2 = _fold_layer(keys[1], hidden_size, hidden_size)
    w3, s3 = _fold_layer(keys[2], hidden_size, hidden_size)
    w4, s4 = _fold_layer(keys[3], hidden_size, vocab_size)

    def prep_w(w, rows, cols):
        wp = jnp.pad(w, ((0, rows - w.shape[0]), (0, cols - w.shape[1])))
        return wp.astype(jnp.bfloat16)     # MXU-native; f32 accumulation in-kernel

    def prep_s(s, cols):
        return jnp.pad(s, ((0, 0), (0, cols - s.shape[1]))).astype(jnp.float32)

    return {
        "w1": prep_w(w1, Rp, Hp), "s1": prep_s(s1, Hp),
        "w2": prep_w(w2, Hp, Hp), "s2": prep_s(s2, Hp),
        "w3": prep_w(w3, Hp, Hp), "s3": prep_s(s3, Hp),
        "w4": prep_w(w4, Hp, Vp), "s4": prep_s(s4, Vp),
        "dims": (resnet_out_size, hidden_size, vocab_size),
        "padded_dims": (Rp, Hp, Vp),
    }


def _reference(features, params):
    """Pure-JAX reference with the same numerics (bf16 matmul inputs, f32 acc)."""
    R, H, V = params["dims"]
    Rp, Hp, Vp = params["padded_dims"]
    x = features.reshape(features.shape[0], -1).astype(jnp.float32)
    x = jnp.pad(x, ((0, 0), (0, Rp - R)))
    for i in (1, 2, 3, 4):
        w, s = params[f"w{i}"], params[f"s{i}"]
        z = jnp.dot(x.astype(jnp.bfloat16), w, preferred_element_type=jnp.float32)
        x = jnp.maximum(z + s, 0.0)
    return x[:, :V]


if __name__ == "__main__":
    # Small shapes: B=8, input features 4x4x4 -> resnet_out_size=64,
    # hidden_size=32, vocab_size=16.
    B, C, Hs, Ws = 8, 4, 4, 4
    resnet_out_size = C * Hs * Ws
    hidden_size = 32
    vocab_size = 16

    key = jax.random.PRNGKey(0)
    features = jax.random.normal(key, (B, C, Hs, Ws), dtype=jnp.float32)

    params = make_params(resnet_out_size, hidden_size, vocab_size)

    out = att_mlp_forward(features, params)
    out = jax.block_until_ready(out)

    ref = _reference(features, params)
    assert out.shape == (B, vocab_size)
    assert jnp.allclose(out, ref, atol=2e-3, rtol=2e-3), (
        "max abs err = %f" % float(jnp.max(jnp.abs(out - ref))))

    print("KERNEL_OK")
</pallas_src>

<mosaic_0001>
module attributes {stable_mosaic.version = 11 : i64} {
  func.func @_fused_mlp_kernel(%arg0: i32, %arg1: memref<8x128xf32, #tpu.memory_space<vmem>>, %arg2: memref<128x128xbf16, #tpu.memory_space<vmem>>, %arg3: memref<1x128xf32, #tpu.memory_space<vmem>>, %arg4: memref<128x128xbf16, #tpu.memory_space<vmem>>, %arg5: memref<1x128xf32, #tpu.memory_space<vmem>>, %arg6: memref<128x128xbf16, #tpu.memory_space<vmem>>, %arg7: memref<1x128xf32, #tpu.memory_space<vmem>>, %arg8: memref<128x128xbf16, #tpu.memory_space<vmem>>, %arg9: memref<1x128xf32, #tpu.memory_space<vmem>>, %arg10: memref<8x128xf32, #tpu.memory_space<vmem>>) attributes {dimension_semantics = [#tpu.dimension_semantics<parallel>], iteration_bounds = array<i64: 1>, scalar_prefetch = 0 : i64, scratch_operands = 0 : i64, tpu.core_type = #tpu.core_type<tc>, window_params = [{transform_indices = @transform_0, window_bounds = array<i64: 8, 128>}, {pipeline_mode = #tpu.pipeline_mode<synchronous>, transform_indices = @transform_1, window_bounds = array<i64: 128, 128>}, {pipeline_mode = #tpu.pipeline_mode<synchronous>, transform_indices = @transform_2, window_bounds = array<i64: 1, 128>}, {pipeline_mode = #tpu.pipeline_mode<synchronous>, transform_indices = @transform_3, window_bounds = array<i64: 128, 128>}, {pipeline_mode = #tpu.pipeline_mode<synchronous>, transform_indices = @transform_4, window_bounds = array<i64: 1, 128>}, {pipeline_mode = #tpu.pipeline_mode<synchronous>, transform_indices = @transform_5, window_bounds = array<i64: 128, 128>}, {pipeline_mode = #tpu.pipeline_mode<synchronous>, transform_indices = @transform_6, window_bounds = array<i64: 1, 128>}, {pipeline_mode = #tpu.pipeline_mode<synchronous>, transform_indices = @transform_7, window_bounds = array<i64: 128, 128>}, {pipeline_mode = #tpu.pipeline_mode<synchronous>, transform_indices = @transform_8, window_bounds = array<i64: 1, 128>}, {transform_indices = @transform_9, window_bounds = array<i64: 8, 128>}]} {
    %c0 = arith.constant 0 : index
    %c0_0 = arith.constant 0 : index
    %0 = vector.load %arg1[%c0, %c0_0] : memref<8x128xf32, #tpu.memory_space<vmem>>, vector<8x128xf32>
    %1 = arith.truncf %0 : vector<8x128xf32> to vector<8x128xbf16>
    %c0_1 = arith.constant 0 : index
    %c0_2 = arith.constant 0 : index
    %2 = vector.load %arg2[%c0_1, %c0_2] : memref<128x128xbf16, #tpu.memory_space<vmem>>, vector<128x128xbf16>
    %cst = arith.constant dense<0.000000e+00> : vector<8x128xf32>
    %3 = tpu.matmul %1, %2, %cst {dimension_numbers = #tpu.dot_dimension_numbers<[1], [0], [0], [1], [0, 0, 1, 1], [], []>} : vector<8x128xbf16>, vector<128x128xbf16>, vector<8x128xf32> -> vector<8x128xf32>
    %c0_3 = arith.constant 0 : index
    %c0_4 = arith.constant 0 : index
    %4 = vector.load %arg3[%c0_3, %c0_4] : memref<1x128xf32, #tpu.memory_space<vmem>>, vector<1x128xf32>
    %5 = vector.broadcast %4 : vector<1x128xf32> to vector<8x128xf32>
    %6 = arith.addf %3, %5 : vector<8x128xf32>
    %cst_5 = arith.constant 0.000000e+00 : f32
    %7 = vector.broadcast %cst_5 : f32 to vector<8x128xf32>
    %8 = arith.maximumf %6, %7 : vector<8x128xf32>
    %9 = arith.truncf %8 : vector<8x128xf32> to vector<8x128xbf16>
    %c0_6 = arith.constant 0 : index
    %c0_7 = arith.constant 0 : index
    %10 = vector.load %arg4[%c0_6, %c0_7] : memref<128x128xbf16, #tpu.memory_space<vmem>>, vector<128x128xbf16>
    %cst_8 = arith.constant dense<0.000000e+00> : vector<8x128xf32>
    %11 = tpu.matmul %9, %10, %cst_8 {dimension_numbers = #tpu.dot_dimension_numbers<[1], [0], [0], [1], [0, 0, 1, 1], [], []>} : vector<8x128xbf16>, vector<128x128xbf16>, vector<8x128xf32> -> vector<8x128xf32>
    %c0_9 = arith.constant 0 : index
    %c0_10 = arith.constant 0 : index
    %12 = vector.load %arg5[%c0_9, %c0_10] : memref<1x128xf32, #tpu.memory_space<vmem>>, vector<1x128xf32>
    %13 = vector.broadcast %12 : vector<1x128xf32> to vector<8x128xf32>
    %14 = arith.addf %11, %13 : vector<8x128xf32>
    %cst_11 = arith.constant 0.000000e+00 : f32
    %15 = vector.broadcast %cst_11 : f32 to vector<8x128xf32>
    %16 = arith.maximumf %14, %15 : vector<8x128xf32>
    %17 = arith.truncf %16 : vector<8x128xf32> to vector<8x128xbf16>
    %c0_12 = arith.constant 0 : index
    %c0_13 = arith.constant 0 : index
    %18 = vector.load %arg6[%c0_12, %c0_13] : memref<128x128xbf16, #tpu.memory_space<vmem>>, vector<128x128xbf16>
    %cst_14 = arith.constant dense<0.000000e+00> : vector<8x128xf32>
    %19 = tpu.matmul %17, %18, %cst_14 {dimension_numbers = #tpu.dot_dimension_numbers<[1], [0], [0], [1], [0, 0, 1, 1], [], []>} : vector<8x128xbf16>, vector<128x128xbf16>, vector<8x128xf32> -> vector<8x128xf32>
    %c0_15 = arith.constant 0 : index
    %c0_16 = arith.constant 0 : index
    %20 = vector.load %arg7[%c0_15, %c0_16] : memref<1x128xf32, #tpu.memory_space<vmem>>, vector<1x128xf32>
    %21 = vector.broadcast %20 : vector<1x128xf32> to vector<8x128xf32>
    %22 = arith.addf %19, %21 : vector<8x128xf32>
    %cst_17 = arith.constant 0.000000e+00 : f32
    %23 = vector.broadcast %cst_17 : f32 to vector<8x128xf32>
    %24 = arith.maximumf %22, %23 : vector<8x128xf32>
    %25 = arith.truncf %24 : vector<8x128xf32> to vector<8x128xbf16>
    %c0_18 = arith.constant 0 : index
    %c0_19 = arith.constant 0 : index
    %26 = vector.load %arg8[%c0_18, %c0_19] : memref<128x128xbf16, #tpu.memory_space<vmem>>, vector<128x128xbf16>
    %cst_20 = arith.constant dense<0.000000e+00> : vector<8x128xf32>
    %27 = tpu.matmul %25, %26, %cst_20 {dimension_numbers = #tpu.dot_dimension_numbers<[1], [0], [0], [1], [0, 0, 1, 1], [], []>} : vector<8x128xbf16>, vector<128x128xbf16>, vector<8x128xf32> -> vector<8x128xf32>
    %c0_21 = arith.constant 0 : index
    %c0_22 = arith.constant 0 : index
    %28 = vector.load %arg9[%c0_21, %c0_22] : memref<1x128xf32, #tpu.memory_space<vmem>>, vector<1x128xf32>
    %29 = vector.broadcast %28 : vector<1x128xf32> to vector<8x128xf32>
    %30 = arith.addf %27, %29 : vector<8x128xf32>
    %cst_23 = arith.constant 0.000000e+00 : f32
    %31 = vector.broadcast %cst_23 : f32 to vector<8x128xf32>
    %32 = arith.maximumf %30, %31 : vector<8x128xf32>
    %c0_24 = arith.constant 0 : index
    %c0_25 = arith.constant 0 : index
    %33 = vector.load %arg10[%c0_24, %c0_25] : memref<8x128xf32, #tpu.memory_space<vmem>>, vector<8x128xf32>
    tpu.vector_store %arg10[%c0_24, %c0_25], %32 {strides = array<i32>} : memref<8x128xf32, #tpu.memory_space<vmem>>, vector<8x128xf32>,
    return
  }
  func.func @transform_0(%arg0: i32) -> (i32, i32) {
    %c0_i32 = arith.constant 0 : i32
    %c0_i32_0 = arith.constant 0 : i32
    return %arg0, %c0_i32 : i32, i32
  }
  func.func @transform_1(%arg0: i32) -> (i32, i32) {
    %c0_i32 = arith.constant 0 : i32
    %c0_i32_0 = arith.constant 0 : i32
    %c0_i32_1 = arith.constant 0 : i32
    return %c0_i32, %c0_i32_0 : i32, i32
  }
  func.func @transform_2(%arg0: i32) -> (i32, i32) {
    %c0_i32 = arith.constant 0 : i32
    %c0_i32_0 = arith.constant 0 : i32
    %c0_i32_1 = arith.constant 0 : i32
    return %c0_i32, %c0_i32_0 : i32, i32
  }
  func.func @transform_3(%arg0: i32) -> (i32, i32) {
    %c0_i32 = arith.constant 0 : i32
    %c0_i32_0 = arith.constant 0 : i32
    %c0_i32_1 = arith.constant 0 : i32
    return %c0_i32, %c0_i32_0 : i32, i32
  }
  func.func @transform_4(%arg0: i32) -> (i32, i32) {
    %c0_i32 = arith.constant 0 : i32
    %c0_i32_0 = arith.constant 0 : i32
    %c0_i32_1 = arith.constant 0 : i32
    return %c0_i32, %c0_i32_0 : i32, i32
  }
  func.func @transform_5(%arg0: i32) -> (i32, i32) {
    %c0_i32 = arith.constant 0 : i32
    %c0_i32_0 = arith.constant 0 : i32
    %c0_i32_1 = arith.constant 0 : i32
    return %c0_i32, %c0_i32_0 : i32, i32
  }
  func.func @transform_6(%arg0: i32) -> (i32, i32) {
    %c0_i32 = arith.constant 0 : i32
    %c0_i32_0 = arith.constant 0 : i32
    %c0_i32_1 = arith.constant 0 : i32
    return %c0_i32, %c0_i32_0 : i32, i32
  }
  func.func @transform_7(%arg0: i32) -> (i32, i32) {
    %c0_i32 = arith.constant 0 : i32
    %c0_i32_0 = arith.constant 0 : i32
    %c0_i32_1 = arith.constant 0 : i32
    return %c0_i32, %c0_i32_0 : i32, i32
  }
  func.func @transform_8(%arg0: i32) -> (i32, i32) {
    %c0_i32 = arith.constant 0 : i32
    %c0_i32_0 = arith.constant 0 : i32
    %c0_i32_1 = arith.constant 0 : i32
    return %c0_i32, %c0_i32_0 : i32, i32
  }
  func.func @transform_9(%arg0: i32) -> (i32, i32) {
    %c0_i32 = arith.constant 0 : i32
    %c0_i32_0 = arith.constant 0 : i32
    return %arg0, %c0_i32 : i32, i32
  }
}

module attributes {stable_mosaic.version = 11 : i64} {
  func.func @_fused_mlp_kernel(%arg0: i32, %arg1: memref<8x128xf32, #tpu.memory_space<vmem>>, %arg2: memref<128x128xbf16, #tpu.memory_space<vmem>>, %arg3: memref<1x128xf32, #tpu.memory_space<vmem>>, %arg4: memref<128x128xbf16, #tpu.memory_space<vmem>>, %arg5: memref<1x128xf32, #tpu.memory_space<vmem>>, %arg6: memref<128x128xbf16, #tpu.memory_space<vmem>>, %arg7: memref<1x128xf32, #tpu.memory_space<vmem>>, %arg8: memref<128x128xbf16, #tpu.memory_space<vmem>>, %arg9: memref<1x128xf32, #tpu.memory_space<vmem>>, %arg10: memref<8x128xf32, #tpu.memory_space<vmem>>) attributes {dimension_semantics = [#tpu.dimension_semantics<parallel>], iteration_bounds = array<i64: 1>, scalar_prefetch = 0 : i64, scratch_operands = 0 : i64, tpu.core_type = #tpu.core_type<tc>, window_params = [{transform_indices = @transform_0, window_bounds = array<i64: 8, 128>}, {pipeline_mode = #tpu.pipeline_mode<synchronous>, transform_indices = @transform_1, window_bounds = array<i64: 128, 128>}, {pipeline_mode = #tpu.pipeline_mode<synchronous>, transform_indices = @transform_2, window_bounds = array<i64: 1, 128>}, {pipeline_mode = #tpu.pipeline_mode<synchronous>, transform_indices = @transform_3, window_bounds = array<i64: 128, 128>}, {pipeline_mode = #tpu.pipeline_mode<synchronous>, transform_indices = @transform_4, window_bounds = array<i64: 1, 128>}, {pipeline_mode = #tpu.pipeline_mode<synchronous>, transform_indices = @transform_5, window_bounds = array<i64: 128, 128>}, {pipeline_mode = #tpu.pipeline_mode<synchronous>, transform_indices = @transform_6, window_bounds = array<i64: 1, 128>}, {pipeline_mode = #tpu.pipeline_mode<synchronous>, transform_indices = @transform_7, window_bounds = array<i64: 128, 128>}, {pipeline_mode = #tpu.pipeline_mode<synchronous>, transform_indices = @transform_8, window_bounds = array<i64: 1, 128>}, {transform_indices = @transform_9, window_bounds = array<i64: 8, 128>}]} {
    %c0 = arith.constant 0 : index
    %c0_0 = arith.constant 0 : index
    %0 = vector.load %arg1[%c0, %c0_0] : memref<8x128xf32, #tpu.memory_space<vmem>>, vector<8x128xf32>
    %1 = arith.truncf %0 : vector<8x128xf32> to vector<8x128xbf16>
    %c0_1 = arith.constant 0 : index
    %c0_2 = arith.constant 0 : index
    %2 = vector.load %arg2[%c0_1, %c0_2] : memref<128x128xbf16, #tpu.memory_space<vmem>>, vector<128x128xbf16>
    %cst = arith.constant dense<0.000000e+00> : vector<8x128xf32>
    %3 = tpu.matmul %1, %2, %cst {dimension_numbers = #tpu.dot_dimension_numbers<[1], [0], [0], [1], [0, 0, 1, 1], [], []>} : vector<8x128xbf16>, vector<128x128xbf16>, vector<8x128xf32> -> vector<8x128xf32>
    %c0_3 = arith.constant 0 : index
    %c0_4 = arith.constant 0 : index
    %4 = vector.load %arg3[%c0_3, %c0_4] : memref<1x128xf32, #tpu.memory_space<vmem>>, vector<1x128xf32>
    %5 = vector.broadcast %4 : vector<1x128xf32> to vector<8x128xf32>
    %6 = arith.addf %3, %5 : vector<8x128xf32>
    %cst_5 = arith.constant 0.000000e+00 : f32
    %7 = vector.broadcast %cst_5 : f32 to vector<8x128xf32>
    %8 = arith.maximumf %6, %7 : vector<8x128xf32>
    %9 = arith.truncf %8 : vector<8x128xf32> to vector<8x128xbf16>
    %c0_6 = arith.constant 0 : index
    %c0_7 = arith.constant 0 : index
    %10 = vector.load %arg4[%c0_6, %c0_7] : memref<128x128xbf16, #tpu.memory_space<vmem>>, vector<128x128xbf16>
    %cst_8 = arith.constant dense<0.000000e+00> : vector<8x128xf32>
    %11 = tpu.matmul %9, %10, %cst_8 {dimension_numbers = #tpu.dot_dimension_numbers<[1], [0], [0], [1], [0, 0, 1, 1], [], []>} : vector<8x128xbf16>, vector<128x128xbf16>, vector<8x128xf32> -> vector<8x128xf32>
    %c0_9 = arith.constant 0 : index
    %c0_10 = arith.constant 0 : index
    %12 = vector.load %arg5[%c0_9, %c0_10] : memref<1x128xf32, #tpu.memory_space<vmem>>, vector<1x128xf32>
    %13 = vector.broadcast %12 : vector<1x128xf32> to vector<8x128xf32>
    %14 = arith.addf %11, %13 : vector<8x128xf32>
    %cst_11 = arith.constant 0.000000e+00 : f32
    %15 = vector.broadcast %cst_11 : f32 to vector<8x128xf32>
    %16 = arith.maximumf %14, %15 : vector<8x128xf32>
    %17 = arith.truncf %16 : vector<8x128xf32> to vector<8x128xbf16>
    %c0_12 = arith.constant 0 : index
    %c0_13 = arith.constant 0 : index
    %18 = vector.load %arg6[%c0_12, %c0_13] : memref<128x128xbf16, #tpu.memory_space<vmem>>, vector<128x128xbf16>
    %cst_14 = arith.constant dense<0.000000e+00> : vector<8x128xf32>
    %19 = tpu.matmul %17, %18, %cst_14 {dimension_numbers = #tpu.dot_dimension_numbers<[1], [0], [0], [1], [0, 0, 1, 1], [], []>} : vector<8x128xbf16>, vector<128x128xbf16>, vector<8x128xf32> -> vector<8x128xf32>
    %c0_15 = arith.constant 0 : index
    %c0_16 = arith.constant 0 : index
    %20 = vector.load %arg7[%c0_15, %c0_16] : memref<1x128xf32, #tpu.memory_space<vmem>>, vector<1x128xf32>
    %21 = vector.broadcast %20 : vector<1x128xf32> to vector<8x128xf32>
    %22 = arith.addf %19, %21 : vector<8x128xf32>
    %cst_17 = arith.constant 0.000000e+00 : f32
    %23 = vector.broadcast %cst_17 : f32 to vector<8x128xf32>
    %24 = arith.maximumf %22, %23 : vector<8x128xf32>
    %25 = arith.truncf %24 : vector<8x128xf32> to vector<8x128xbf16>
    %c0_18 = arith.constant 0 : index
    %c0_19 = arith.constant 0 : index
    %26 = vector.load %arg8[%c0_18, %c0_19] : memref<128x128xbf16, #tpu.memory_space<vmem>>, vector<128x128xbf16>
    %cst_20 = arith.constant dense<0.000000e+00> : vector<8x128xf32>
    %27 = tpu.matmul %25, %26, %cst_20 {dimension_numbers = #tpu.dot_dimension_numbers<[1], [0], [0], [1], [0, 0, 1, 1], [], []>} : vector<8x128xbf16>, vector<128x128xbf16>, vector<8x128xf32> -> vector<8x128xf32>
    %c0_21 = arith.constant 0 : index
    %c0_22 = arith.constant 0 : index
    %28 = vector.load %arg9[%c0_21, %c0_22] : memref<1x128xf32, #tpu.memory_space<vmem>>, vector<1x128xf32>
    %29 = vector.broadcast %28 : vector<1x128xf32> to vector<8x128xf32>
    %30 = arith.addf %27, %29 : vector<8x128xf32>
    %cst_23 = arith.constant 0.000000e+00 : f32
    %31 = vector.broadcast %cst_23 : f32 to vector<8x128xf32>
    %32 = arith.maximumf %30, %31 : vector<8x128xf32>
    %c0_24 = arith.constant 0 : index
    %c0_25 = arith.constant 0 : index
    %33 = vector.load %arg10[%c0_24, %c0_25] : memref<8x128xf32, #tpu.memory_space<vmem>>, vector<8x128xf32>
    tpu.vector_store %arg10[%c0_24, %c0_25], %32 {strides = array<i32>} : memref<8x128xf32, #tpu.memory_space<vmem>>, vector<8x128xf32>,
    return
  }
  func.func @transform_0(%arg0: i32) -> (i32, i32) {
    %c0_i32 = arith.constant 0 : i32
    %c0_i32_0 = arith.constant 0 : i32
    return %arg0, %c0_i32 : i32, i32
  }
  func.func @transform_1(%arg0: i32) -> (i32, i32) {
    %c0_i32 = arith.constant 0 : i32
    %c0_i32_0 = arith.constant 0 : i32
    %c0_i32_1 = arith.constant 0 : i32
    return %c0_i32, %c0_i32_0 : i32, i32
  }
  func.func @transform_2(%arg0: i32) -> (i32, i32) {
    %c0_i32 = arith.constant 0 : i32
    %c0_i32_0 = arith.constant 0 : i32
    %c0_i32_1 = arith.constant 0 : i32
    return %c0_i32, %c0_i32_0 : i32, i32
  }
  func.func @transform_3(%arg0: i32) -> (i32, i32) {
    %c0_i32 = arith.constant 0 : i32
    %c0_i32_0 = arith.constant 0 : i32
    %c0_i32_1 = arith.constant 0 : i32
    return %c0_i32, %c0_i32_0 : i32, i32
  }
  func.func @transform_4(%arg0: i32) -> (i32, i32) {
    %c0_i32 = arith.constant 0 : i32
    %c0_i32_0 = arith.constant 0 : i32
    %c0_i32_1 = arith.constant 0 : i32
    return %c0_i32, %c0_i32_0 : i32, i32
  }
  func.func @transform_5(%arg0: i32) -> (i32, i32) {
    %c0_i32 = arith.constant 0 : i32
    %c0_i32_0 = arith.constant 0 : i32
    %c0_i32_1 = arith.constant 0 : i32
    return %c0_i32, %c0_i32_0 : i32, i32
  }
  func.func @transform_6(%arg0: i32) -> (i32, i32) {
    %c0_i32 = arith.constant 0 : i32
    %c0_i32_0 = arith.constant 0 : i32
    %c0_i32_1 = arith.constant 0 : i32
    return %c0_i32, %c0_i32_0 : i32, i32
  }
  func.func @transform_7(%arg0: i32) -> (i32, i32) {
    %c0_i32 = arith.constant 0 : i32
    %c0_i32_0 = arith.constant 0 : i32
    %c0_i32_1 = arith.constant 0 : i32
    return %c0_i32, %c0_i32_0 : i32, i32
  }
  func.func @transform_8(%arg0: i32) -> (i32, i32) {
    %c0_i32 = arith.constant 0 : i32
    %c0_i32_0 = arith.constant 0 : i32
    %c0_i32_1 = arith.constant 0 : i32
    return %c0_i32, %c0_i32_0 : i32, i32
  }
  func.func @transform_9(%arg0: i32) -> (i32, i32) {
    %c0_i32 = arith.constant 0 : i32
    %c0_i32_0 = arith.constant 0 : i32
    return %arg0, %c0_i32 : i32, i32
  }
}

</mosaic_0001>

<bundles_post_ra>
// kernel: tpu_custom_call.1
= control target key start
LH: loop header
LB: loop body
LE: loop exit
PB: predicated region body
PF: predicated region fallthrough
CT: control target
= control target key end

     0   :  { %14 = vsyncpa [#allocation3], 0  ;;  %s1035_s0 = inlined_call_operand.hbm [shape: f32[8,128], index: 0, kind: input, shape index: {}]   ;;  %s1036_s1 = inlined_call_operand.hbm [shape: bf16[128,128], index: 1, kind: input, shape index: {}]   ;;  %s1037_s2 = inlined_call_operand.vmem [shape: f32[1,128], index: 2, kind: input, shape index: {}]   ;;  %s1038_s3 = inlined_call_operand.hbm [shape: bf16[128,128], index: 3, kind: input, shape index: {}]   ;;  %s1039_s4 = inlined_call_operand.vmem [shape: f32[1,128], index: 4, kind: input, shape index: {}]   ;;  %s1040_s5 = inlined_call_operand.hbm [shape: bf16[128,128], index: 5, kind: input, shape index: {}]   ;;  %s1041_s6 = inlined_call_operand.vmem [shape: f32[1,128], index: 6, kind: input, shape index: {}]   ;;  %s1042_s7 = inlined_call_operand.hbm [shape: bf16[128,128], index: 7, kind: input, shape index: {}]   ;;  %s1043_s8 = inlined_call_operand.vmem [shape: f32[1,128], index: 8, kind: input, shape index: {}]   ;;  %s1044_s9 = inlined_call_operand.hbm [shape: f32[8,128], index: 9, kind: output, shape index: {}]  }
   0x1   :  { %15 = vsyncpa [#allocation6], 0 }
   0x2   :  { %16 = vsyncpa [#allocation9], 0 }
   0x3   :  { %17 = vsyncpa [#allocation4], 0  ;;  %s893_s30 = smov [#allocation5]  }
   0x4   :  { %s33_s10 = sshll.u32 %s893_s30, 4  ;;  %s34_s10 = int_to_ptr.vmem [resolvable:$true] %s33_s10 }
   0x5   :  { %s773_s11 = scalar_lea.vmem %s34_s10, 1024  ;;  %p778_p1 = scmp.lt.s32.totalorder %s34_s10, %s34_s10 }
   0x6   :  { %p774_p0 = scmp.ne.s32.totalorder %s34_s10, %s773_s11  ;;  %p779_p2 = scmp.lt.s32.totalorder %s773_s11, %s773_s11 }
   0x8   :  { %p780_p3 = por %p779_p2, %p778_p1 }
   0xa   :  { %p781_p4 = pnand %p780_p3, %p774_p0 }
   0xc   :  { %784 = shalt.err (!%p781_p4)
}
   0xd   :  { %s894_s12 = smov 64   ;;  %s895_s13 = smov 4  }
   0xe   :  { %39 = dma.hbm_to_vmem [thread:$0]  %s1036_s1, 1024, %s34_s10, [#allocation6], %s894_s12, %s894_s12, %s895_s13  }
   0xf   :  { %s896_s16 = smov [#allocation8]   ;;  %s897_s18 = smov [#allocation2]  }
  0x10   :  { %s61_s17 = sshll.u32 %s896_s16, 4  ;;  %s24_s19 = sshll.u32 %s897_s18, 4  ;;  %s62_s17 = int_to_ptr.vmem [resolvable:$true] %s61_s17  ;;  %s25_s19 = int_to_ptr.vmem [resolvable:$true] %s24_s19 }
  0x11   :  { %s793_s20 = scalar_lea.vmem %s62_s17, 1024  ;;  %p798_p6 = scmp.lt.s32.totalorder %s62_s17, %s62_s17 }
  0x12   :  { %p794_p5 = scmp.ne.s32.totalorder %s62_s17, %s793_s20  ;;  %p799_p7 = scmp.lt.s32.totalorder %s793_s20, %s793_s20 }
  0x14   :  { %p800_p8 = por %p799_p7, %p798_p6 }
  0x16   :  { %p801_p9 = pnand %p800_p8, %p794_p5 }
  0x18   :  { %804 = shalt.err (!%p801_p9)
}
  0x19   :  { %67 = dma.hbm_to_vmem [thread:$0]  %s1040_s5, 1024, %s62_s17, [#allocation9], %s894_s12, %s894_s12, %s895_s13  }
  0x1a   :  { %s813_s1 = scalar_lea.vmem %s25_s19, 128  ;;  %p818_p11 = scmp.lt.s32.totalorder %s25_s19, %s25_s19 }
  0x1b   :  { %p814_p10 = scmp.ne.s32.totalorder %s25_s19, %s813_s1  ;;  %p819_p12 = scmp.lt.s32.totalorder %s813_s1, %s813_s1 }
  0x1d   :  { %p820_p13 = por %p819_p12, %p818_p11 }
  0x1f   :  { %p821_p0 = pnand %p820_p13, %p814_p10 }
  0x21   :  { %824 = shalt.err (!%p821_p0)
}
  0x22   :  { %27 = dma.hbm_to_vmem [thread:$0]  %s1035_s0, 128, %s25_s19, [#allocation3]  }
  0x23   :  { %s898_s25 = smov [#allocation7]   ;;  %s899_s27 = smov [#allocation10]  }
  0x24   :  { %s47_s26 = sshll.u32 %s898_s25, 4  ;;  %s75_s28 = sshll.u32 %s899_s27, 4  ;;  %s48_s26 = int_to_ptr.vmem [resolvable:$true] %s47_s26  ;;  %s76_s28 = int_to_ptr.vmem [resolvable:$true] %s75_s28 }
  0x25   :  { %s833_s29 = scalar_lea.vmem %s48_s26, 1024  ;;  %p838_p2 = scmp.lt.s32.totalorder %s48_s26, %s48_s26 }
  0x26   :  { %p834_p1 = scmp.ne.s32.totalorder %s48_s26, %s833_s29  ;;  %p839_p3 = scmp.lt.s32.totalorder %s833_s29, %s833_s29 }
  0x28   :  { %p840_p4 = por %p839_p3, %p838_p2 }
  0x2a   :  { %p841_p5 = pnand %p840_p4, %p834_p1 }
  0x2c   :  { %844 = shalt.err (!%p841_p5)
}
  0x2d   :  { %53 = dma.hbm_to_vmem [thread:$0]  %s1038_s3, 1024, %s48_s26, [#allocation6], %s894_s12, %s894_s12, %s895_s13  }
  0x2e   :  { %s853_s0 = scalar_lea.vmem %s76_s28, 1024  ;;  %p858_p7 = scmp.lt.s32.totalorder %s76_s28, %s76_s28 }
  0x2f   :  { %p854_p6 = scmp.ne.s32.totalorder %s76_s28, %s853_s0  ;;  %p859_p8 = scmp.lt.s32.totalorder %s853_s0, %s853_s0 }
  0x31   :  { %p860_p9 = por %p859_p8, %p858_p7 }
  0x33   :  { %p861_p10 = pnand %p860_p9, %p854_p6 }
  0x35   :  { %864 = shalt.err (!%p861_p10)
}
  0x36   :  { %81 = dma.hbm_to_vmem [thread:$0]  %s1042_s7, 1024, %s76_s28, [#allocation9], %s894_s12, %s894_s12, %s895_s13  }
  0x37   :  { %885 = dma.done.wait [#allocation3], 128  }
  0x38   :  { %886 = vsyncadd [#allocation3], 4294967168 }
  0x39   :  { %887 = dma.done.wait [#allocation6], 2048  }
  0x3a   :  { %888 = vsyncadd [#allocation6], 4294965248 }
  0x3b   :  { %889 = dma.done.wait [#allocation9], 2048  }
  0x3c   :  { %890 = vsyncadd [#allocation9], 4294965248  ;;  %v900_v0 = vmov 0.0   ;;  %vm901_vm0 = vmmov 0   ;;  %v733_v1 = vld [vmem:[#allocation5 + $0x38] sm:$0xff]   ;;  %v734_v2 = vld [vmem:[#allocation5 + $0x30] sm:$0xff]  }
  0x3d   :  { %643 = vmatprep.subr.bf16.mxu0 %v900_v0  ;;  %659 = vmatprep.mubr.msk.bf16.mxu0 %vm901_vm0, %v900_v0  ;;  %v735_v3 = vld [vmem:[#allocation5 + $0x28] sm:$0xff]   ;;  %v741_v4 = vld [vmem:[#allocation7 + $0x38] sm:$0xff]   ;;  %v736_v5 = vld [vmem:[#allocation5 + $0x20] sm:$0xff]   ;;  %s902_s16 = smov [#allocation11]  }
  0x3e   :  { %663 = vmatprep.subr.bf16.mxu1 %v900_v0  ;;  %679 = vmatprep.mubr.msk.bf16.mxu1 %vm901_vm0, %v900_v0  ;;  %v742_v6 = vld [vmem:[#allocation7 + $0x30] sm:$0xff]   ;;  %v737_v7 = vld [vmem:[#allocation5 + $0x18] sm:$0xff]   ;;  %v743_v8 = vld [vmem:[#allocation7 + $0x28] sm:$0xff]   ;;  %s560_s17 = sshll.u32 %s902_s16, 4  ;;  %s561_s17 = int_to_ptr.vmem [resolvable:$true] %s560_s17 }
  0x3f   :  { %644 = vmatpush3.bf16.msra.mxu0 %v733_v1  ;;  %664 = vmatpush3.bf16.msra.mxu1 %v741_v4  ;;  %v738_v9 = vld [vmem:[#allocation5 + $0x10] sm:$0xff]   ;;  %v744_v10 = vld [vmem:[#allocation7 + $0x20] sm:$0xff]   ;;  %v739_v11 = vld [vmem:[#allocation5 + $0x8] sm:$0xff]   ;;  %p870_p12 = scmp.lt.s32.totalorder %s561_s17, %s561_s17 }
  0x40   :  { %645 = vmatprep.subr.bf16.mxu0 %v900_v0  ;;  %665 = vmatprep.subr.bf16.mxu1 %v900_v0  ;;  %v745_v12 = vld [vmem:[#allocation7 + $0x18] sm:$0xff]   ;;  %v740_v13 = vld [vmem:[#allocation5] sm:$0xff]   ;;  %v746_v15 = vld [vmem:[#allocation7 + $0x10] sm:$0xff]  }
  0x41   :  { %v100_v14 = vld [vmem:[#allocation2] sm:$0xff]  ;;  %v747_v17 = vld [vmem:[#allocation7 + $0x8] sm:$0xff]   ;;  %v748_v18 = vld [vmem:[#allocation7] sm:$0xff]  }
  0x42   :  { %v101_v16 = vpack.c.bf16 %v100_v14, %v100_v14  ;;  %v749_v19 = vld [vmem:[#allocation8 + $0x38] sm:$0xff]   ;;  %v750_v20 = vld [vmem:[#allocation8 + $0x30] sm:$0xff]   ;;  %v751_v21 = vld [vmem:[#allocation8 + $0x28] sm:$0xff]  }
  0x43   :  { %646 = vmatpush3.bf16.msra.mxu0 %v734_v2  ;;  %666 = vmatpush3.bf16.msra.mxu1 %v742_v6  ;;  %v752_v22 = vld [vmem:[#allocation8 + $0x20] sm:$0xff]   ;;  %v753_v23 = vld [vmem:[#allocation8 + $0x18] sm:$0xff]   ;;  %v754_v24 = vld [vmem:[#allocation8 + $0x10] sm:$0xff]  }
  0x44   :  { %647 = vmatprep.subr.bf16.mxu0 %v900_v0  ;;  %667 = vmatprep.subr.bf16.mxu1 %v900_v0  ;;  %v571_v25 = vld [vmem:[%s1037_s2] ss:$0 sm:$0xff]  ;;  %v755_v33 = vld [vmem:[#allocation8 + $0x8] sm:$0xff]   ;;  %v756_v34 = vld [vmem:[#allocation8] sm:$0xff]  }
  0x45   :  { %v757_v35 = vld [vmem:[#allocation10 + $0x38] sm:$0xff]   ;;  %v758_v36 = vld [vmem:[#allocation10 + $0x30] sm:$0xff]   ;;  %v759_v37 = vld [vmem:[#allocation10 + $0x28] sm:$0xff]  }
  0x46   :  { %v760_v38 = vld [vmem:[#allocation10 + $0x20] sm:$0xff]   ;;  %v761_v39 = vld [vmem:[#allocation10 + $0x18] sm:$0xff]   ;;  %v762_v40 = vld [vmem:[#allocation10 + $0x10] sm:$0xff]  }
  0x47   :  { %648 = vmatpush3.bf16.msra.mxu0 %v735_v3  ;;  %668 = vmatpush3.bf16.msra.mxu1 %v743_v8  ;;  %v580_v41 = vld [vmem:[%s1039_s4] ss:$0 sm:$0xff]  ;;  %v763_v49 = vld [vmem:[#allocation10 + $0x8] sm:$0xff]   ;;  %v764_v50 = vld [vmem:[#allocation10] sm:$0xff]  }
  0x48   :  { %649 = vmatprep.subr.bf16.mxu0 %v900_v0  ;;  %669 = vmatprep.subr.bf16.mxu1 %v900_v0  ;;  %v589_v51 = vld [vmem:[%s1041_s6] ss:$0 sm:$0xff]  ;;  %s865_s6 = scalar_lea.vmem %s561_s17, 128 }
  0x49   :  { %v598_v59 = vld [vmem:[%s1043_s8] ss:$0 sm:$0xff]  ;;  %p866_p11 = scmp.ne.s32.totalorder %s561_s17, %s865_s6  ;;  %p871_p13 = scmp.lt.s32.totalorder %s865_s6, %s865_s6 }
  0x4b   :  { %650 = vmatpush3.bf16.msra.mxu0 %v736_v5  ;;  %670 = vmatpush3.bf16.msra.mxu1 %v744_v10  ;;  %p872_p0 = por %p871_p13, %p870_p12 }
  0x4c   :  { %651 = vmatprep.subr.bf16.mxu0 %v900_v0  ;;  %671 = vmatprep.subr.bf16.mxu1 %v900_v0 }
  0x4d   :  { %p873_p1 = pnand %p872_p0, %p866_p11 }
  0x4f   :  { %652 = vmatpush3.bf16.msra.mxu0 %v737_v7  ;;  %672 = vmatpush3.bf16.msra.mxu1 %v745_v12 }
  0x50   :  { %653 = vmatprep.subr.bf16.mxu0 %v900_v0  ;;  %673 = vmatprep.subr.bf16.mxu1 %v900_v0 }
  0x53   :  { %654 = vmatpush3.bf16.msra.mxu0 %v738_v9  ;;  %674 = vmatpush3.bf16.msra.mxu1 %v746_v15 }
  0x54   :  { %655 = vmatprep.subr.bf16.mxu0 %v900_v0  ;;  %675 = vmatprep.subr.bf16.mxu1 %v900_v0 }
  0x57   :  { %656 = vmatpush3.bf16.msra.mxu0 %v739_v11  ;;  %676 = vmatpush3.bf16.msra.mxu1 %v747_v17 }
  0x58   :  { %657 = vmatprep.subr.bf16.mxu0 %v900_v0  ;;  %677 = vmatprep.subr.bf16.mxu1 %v900_v0 }
  0x5b   :  { %658 = vmatpush3.bf16.msra.mxu0 %v740_v13  ;;  %678 = vmatpush3.bf16.msra.mxu1 %v748_v18 }
  0x5c   :  { %683 = vmatprep.subr.bf16.mxu0 %v900_v0  ;;  %703 = vmatprep.subr.bf16.mxu1 %v900_v0 }
  0x5e   :  { %660 = vmatmul.mubr.bf16.vlgmr.msra.gmra.mxu0 %v101_v16 }
  0x5f   :  { %699 = vmatprep.mubr.msk.bf16.mxu0 %vm901_vm0, %v900_v0  ;;  %684 = vmatpush3.bf16.msra.mxu0 %v749_v19 }
  0x60   :  { %685 = vmatprep.subr.bf16.mxu0 %v900_v0 }
  0x63   :  { %686 = vmatpush3.bf16.msra.mxu0 %v750_v20 }
  0x64   :  { %687 = vmatprep.subr.bf16.mxu0 %v900_v0 }
  0x67   :  { %688 = vmatpush3.bf16.msra.mxu0 %v751_v21 }
  0x68   :  { %689 = vmatprep.subr.bf16.mxu0 %v900_v0 }
  0x6b   :  { %690 = vmatpush3.bf16.msra.mxu0 %v752_v22 }
  0x6c   :  { %691 = vmatprep.subr.bf16.mxu0 %v900_v0 }
  0x6f   :  { %692 = vmatpush3.bf16.msra.mxu0 %v753_v23 }
  0x70   :  { %693 = vmatprep.subr.bf16.mxu0 %v900_v0 }
  0x73   :  { %694 = vmatpush3.bf16.msra.mxu0 %v754_v24 }
  0x74   :  { %695 = vmatprep.subr.bf16.mxu0 %v900_v0 }
  0x77   :  { %696 = vmatpush3.bf16.msra.mxu0 %v755_v33 }
  0x78   :  { %697 = vmatprep.subr.bf16.mxu0 %v900_v0 }
  0x7b   :  { %698 = vmatpush3.bf16.msra.mxu0 %v756_v34 }
 0x11e   :  { %v207_v26 = vpop.f32.mrf.mxu0 }
 0x11f   :  { %v208_v27 = vadd.f32 %v571_v25, %v207_v26 }
 0x120   :  { %v661_v28 = vpop.f32.mrf.mxu0 }
 0x121   :  { %v213_v29 = vmax.f32 %v208_v27, 0.0 }
 0x122   :  { %v210_v30 = vpop.f32.mrf.mxu0 }
 0x123   :  { %v214_v31 = vpack.c.bf16 %v213_v29, %v213_v29 }
 0x124   :  { %v662_v32 = vpop.f32.mrf.mxu0 }
 0x125   :  { %680 = vmatmul.mubr.bf16.vlgmr.msra.gmra.mxu1 %v214_v31 }
 0x126   :  { %719 = vmatprep.mubr.msk.bf16.mxu1 %vm901_vm0, %v900_v0  ;;  %704 = vmatpush3.bf16.msra.mxu1 %v757_v35 }
 0x127   :  { %705 = vmatprep.subr.bf16.mxu1 %v900_v0 }
 0x12a   :  { %706 = vmatpush3.bf16.msra.mxu1 %v758_v36 }
 0x12b   :  { %707 = vmatprep.subr.bf16.mxu1 %v900_v0 }
 0x12e   :  { %708 = vmatpush3.bf16.msra.mxu1 %v759_v37 }
 0x12f   :  { %709 = vmatprep.subr.bf16.mxu1 %v900_v0 }
 0x132   :  { %710 = vmatpush3.bf16.msra.mxu1 %v760_v38 }
 0x133   :  { %711 = vmatprep.subr.bf16.mxu1 %v900_v0 }
 0x136   :  { %712 = vmatpush3.bf16.msra.mxu1 %v761_v39 }
 0x137   :  { %713 = vmatprep.subr.bf16.mxu1 %v900_v0 }
 0x13a   :  { %714 = vmatpush3.bf16.msra.mxu1 %v762_v40 }
 0x13b   :  { %715 = vmatprep.subr.bf16.mxu1 %v900_v0 }
 0x13e   :  { %716 = vmatpush3.bf16.msra.mxu1 %v763_v49 }
 0x13f   :  { %717 = vmatprep.subr.bf16.mxu1 %v900_v0 }
 0x142   :  { %718 = vmatpush3.bf16.msra.mxu1 %v764_v50 }
 0x1e5   :  { %v320_v42 = vpop.f32.mrf.mxu1 }
 0x1e6   :  { %v321_v43 = vadd.f32 %v580_v41, %v320_v42 }
 0x1e7   :  { %v681_v44 = vpop.f32.mrf.mxu1 }
 0x1e8   :  { %v326_v45 = vmax.f32 %v321_v43, 0.0 }
 0x1e9   :  { %v323_v46 = vpop.f32.mrf.mxu1 }
 0x1ea   :  { %v327_v47 = vpack.c.bf16 %v326_v45, %v326_v45 }
 0x1eb   :  { %v682_v48 = vpop.f32.mrf.mxu1 }
 0x1ec   :  { %700 = vmatmul.mubr.bf16.vlgmr.msra.gmra.mxu0 %v327_v47 }
 0x2ac   :  { %v433_v52 = vpop.f32.mrf.mxu0 }
 0x2ad   :  { %v434_v53 = vadd.f32 %v589_v51, %v433_v52 }
 0x2ae   :  { %v701_v54 = vpop.f32.mrf.mxu0 }
 0x2af   :  { %v439_v55 = vmax.f32 %v434_v53, 0.0 }
 0x2b0   :  { %v436_v56 = vpop.f32.mrf.mxu0 }
 0x2b1   :  { %v440_v57 = vpack.c.bf16 %v439_v55, %v439_v55 }
 0x2b2   :  { %v702_v58 = vpop.f32.mrf.mxu0 }
 0x2b3   :  { %720 = vmatmul.mubr.bf16.vlgmr.msra.gmra.mxu1 %v440_v57 }
 0x373   :  { %v546_v60 = vpop.f32.mrf.mxu1 }
 0x374   :  { %v547_v61 = vadd.f32 %v598_v59, %v546_v60 }
 0x375   :  { %v721_v62 = vpop.f32.mrf.mxu1 }
 0x376   :  { %v552_v63 = vmax.f32 %v547_v61, 0.0 }
 0x377   :  { %v549_v0 = vpop.f32.mrf.mxu1 }
 0x378   :  { %553 = vst [vmem:[#allocation11] sm:$0xff] %v552_v63 }
 0x379   :  { %v722_v1 = vpop.f32.mrf.mxu1 }
 0x37a   :  { %876 = shalt.err (!%p873_p1)
}
 0x37b   :  { %563 = dma.vmem_to_hbm [thread:$0]  %s561_s17, 128, %s1044_s9, [#allocation4]  }
 0x37c   :  { %891 = dma.done.wait [#allocation4], 128  }
 0x37d   :  { %892 = vsyncadd [#allocation4], 4294967168 }
 0x37e   :  { %567 = vsyncpa [#allocation3], 1 }
 0x37f   :  { %568 = vsyncpa [#allocation6], 1 }
 0x380   :  { %569 = vsyncpa [#allocation9], 1 }
 0x381   :  { %570 = vsyncpa [#allocation4], 1 }

// kernel: tpu_custom_call.1
= control target key start
LH: loop header
LB: loop body
LE: loop exit
PB: predicated region body
PF: predicated region fallthrough
CT: control target
= control target key end

     0   :  { %14 = vsyncpa [#allocation3], 0  ;;  %s1035_s0 = inlined_call_operand.hbm [shape: f32[8,128], index: 0, kind: input, shape index: {}]   ;;  %s1036_s1 = inlined_call_operand.hbm [shape: bf16[128,128], index: 1, kind: input, shape index: {}]   ;;  %s1037_s2 = inlined_call_operand.vmem [shape: f32[1,128], index: 2, kind: input, shape index: {}]   ;;  %s1038_s3 = inlined_call_operand.hbm [shape: bf16[128,128], index: 3, kind: input, shape index: {}]   ;;  %s1039_s4 = inlined_call_operand.vmem [shape: f32[1,128], index: 4, kind: input, shape index: {}]   ;;  %s1040_s5 = inlined_call_operand.hbm [shape: bf16[128,128], index: 5, kind: input, shape index: {}]   ;;  %s1041_s6 = inlined_call_operand.vmem [shape: f32[1,128], index: 6, kind: input, shape index: {}]   ;;  %s1042_s7 = inlined_call_operand.hbm [shape: bf16[128,128], index: 7, kind: input, shape index: {}]   ;;  %s1043_s8 = inlined_call_operand.vmem [shape: f32[1,128], index: 8, kind: input, shape index: {}]   ;;  %s1044_s9 = inlined_call_operand.hbm [shape: f32[8,128], index: 9, kind: output, shape index: {}]  }
   0x1   :  { %15 = vsyncpa [#allocation6], 0 }
   0x2   :  { %16 = vsyncpa [#allocation9], 0 }
   0x3   :  { %17 = vsyncpa [#allocation4], 0  ;;  %s893_s30 = smov [#allocation5]  }
   0x4   :  { %s33_s10 = sshll.u32 %s893_s30, 4  ;;  %s34_s10 = int_to_ptr.vmem [resolvable:$true] %s33_s10 }
   0x5   :  { %s773_s11 = scalar_lea.vmem %s34_s10, 1024  ;;  %p778_p1 = scmp.lt.s32.totalorder %s34_s10, %s34_s10 }
   0x6   :  { %p774_p0 = scmp.ne.s32.totalorder %s34_s10, %s773_s11  ;;  %p779_p2 = scmp.lt.s32.totalorder %s773_s11, %s773_s11 }
   0x8   :  { %p780_p3 = por %p779_p2, %p778_p1 }
   0xa   :  { %p781_p4 = pnand %p780_p3, %p774_p0 }
   0xc   :  { %784 = shalt.err (!%p781_p4)
}
   0xd   :  { %s894_s12 = smov 64   ;;  %s895_s13 = smov 4  }
   0xe   :  { %39 = dma.hbm_to_vmem [thread:$0]  %s1036_s1, 1024, %s34_s10, [#allocation6], %s894_s12, %s894_s12, %s895_s13  }
   0xf   :  { %s896_s16 = smov [#allocation8]   ;;  %s897_s18 = smov [#allocation2]  }
  0x10   :  { %s61_s17 = sshll.u32 %s896_s16, 4  ;;  %s24_s19 = sshll.u32 %s897_s18, 4  ;;  %s62_s17 = int_to_ptr.vmem [resolvable:$true] %s61_s17  ;;  %s25_s19 = int_to_ptr.vmem [resolvable:$true] %s24_s19 }
  0x11   :  { %s793_s20 = scalar_lea.vmem %s62_s17, 1024  ;;  %p798_p6 = scmp.lt.s32.totalorder %s62_s17, %s62_s17 }
  0x12   :  { %p794_p5 = scmp.ne.s32.totalorder %s62_s17, %s793_s20  ;;  %p799_p7 = scmp.lt.s32.totalorder %s793_s20, %s793_s20 }
  0x14   :  { %p800_p8 = por %p799_p7, %p798_p6 }
  0x16   :  { %p801_p9 = pnand %p800_p8, %p794_p5 }
  0x18   :  { %804 = shalt.err (!%p801_p9)
}
  0x19   :  { %67 = dma.hbm_to_vmem [thread:$0]  %s1040_s5, 1024, %s62_s17, [#allocation9], %s894_s12, %s894_s12, %s895_s13  }
  0x1a   :  { %s813_s1 = scalar_lea.vmem %s25_s19, 128  ;;  %p818_p11 = scmp.lt.s32.totalorder %s25_s19, %s25_s19 }
  0x1b   :  { %p814_p10 = scmp.ne.s32.totalorder %s25_s19, %s813_s1  ;;  %p819_p12 = scmp.lt.s32.totalorder %s813_s1, %s813_s1 }
  0x1d   :  { %p820_p13 = por %p819_p12, %p818_p11 }
  0x1f   :  { %p821_p0 = pnand %p820_p13, %p814_p10 }
  0x21   :  { %824 = shalt.err (!%p821_p0)
}
  0x22   :  { %27 = dma.hbm_to_vmem [thread:$0]  %s1035_s0, 128, %s25_s19, [#allocation3]  }
  0x23   :  { %s898_s25 = smov [#allocation7]   ;;  %s899_s27 = smov [#allocation10]  }
  0x24   :  { %s47_s26 = sshll.u32 %s898_s25, 4  ;;  %s75_s28 = sshll.u32 %s899_s27, 4  ;;  %s48_s26 = int_to_ptr.vmem [resolvable:$true] %s47_s26  ;;  %s76_s28 = int_to_ptr.vmem [resolvable:$true] %s75_s28 }
  0x25   :  { %s833_s29 = scalar_lea.vmem %s48_s26, 1024  ;;  %p838_p2 = scmp.lt.s32.totalorder %s48_s26, %s48_s26 }
  0x26   :  { %p834_p1 = scmp.ne.s32.totalorder %s48_s26, %s833_s29  ;;  %p839_p3 = scmp.lt.s32.totalorder %s833_s29, %s833_s29 }
  0x28   :  { %p840_p4 = por %p839_p3, %p838_p2 }
  0x2a   :  { %p841_p5 = pnand %p840_p4, %p834_p1 }
  0x2c   :  { %844 = shalt.err (!%p841_p5)
}
  0x2d   :  { %53 = dma.hbm_to_vmem [thread:$0]  %s1038_s3, 1024, %s48_s26, [#allocation6], %s894_s12, %s894_s12, %s895_s13  }
  0x2e   :  { %s853_s0 = scalar_lea.vmem %s76_s28, 1024  ;;  %p858_p7 = scmp.lt.s32.totalorder %s76_s28, %s76_s28 }
  0x2f   :  { %p854_p6 = scmp.ne.s32.totalorder %s76_s28, %s853_s0  ;;  %p859_p8 = scmp.lt.s32.totalorder %s853_s0, %s853_s0 }
  0x31   :  { %p860_p9 = por %p859_p8, %p858_p7 }
  0x33   :  { %p861_p10 = pnand %p860_p9, %p854_p6 }
  0x35   :  { %864 = shalt.err (!%p861_p10)
}
  0x36   :  { %81 = dma.hbm_to_vmem [thread:$0]  %s1042_s7, 1024, %s76_s28, [#allocation9], %s894_s12, %s894_s12, %s895_s13  }
  0x37   :  { %885 = dma.done.wait [#allocation3], 128  }
  0x38   :  { %886 = vsyncadd [#allocation3], 4294967168 }
  0x39   :  { %887 = dma.done.wait [#allocation6], 2048  }
  0x3a   :  { %888 = vsyncadd [#allocation6], 4294965248 }
  0x3b   :  { %889 = dma.done.wait [#allocation9], 2048  }
  0x3c   :  { %890 = vsyncadd [#allocation9], 4294965248  ;;  %v900_v0 = vmov 0.0   ;;  %vm901_vm0 = vmmov 0   ;;  %v733_v1 = vld [vmem:[#allocation5 + $0x38] sm:$0xff]   ;;  %v734_v2 = vld [vmem:[#allocation5 + $0x30] sm:$0xff]  }
  0x3d   :  { %643 = vmatprep.subr.bf16.mxu0 %v900_v0  ;;  %659 = vmatprep.mubr.msk.bf16.mxu0 %vm901_vm0, %v900_v0  ;;  %v735_v3 = vld [vmem:[#allocation5 + $0x28] sm:$0xff]   ;;  %v741_v4 = vld [vmem:[#allocation7 + $0x38] sm:$0xff]   ;;  %v736_v5 = vld [vmem:[#allocation5 + $0x20] sm:$0xff]   ;;  %s902_s16 = smov [#allocation11]  }
  0x3e   :  { %663 = vmatprep.subr.bf16.mxu1 %v900_v0  ;;  %679 = vmatprep.mubr.msk.bf16.mxu1 %vm901_vm0, %v900_v0  ;;  %v742_v6 = vld [vmem:[#allocation7 + $0x30] sm:$0xff]   ;;  %v737_v7 = vld [vmem:[#allocation5 + $0x18] sm:$0xff]   ;;  %v743_v8 = vld [vmem:[#allocation7 + $0x28] sm:$0xff]   ;;  %s560_s17 = sshll.u32 %s902_s16, 4  ;;  %s561_s17 = int_to_ptr.vmem [resolvable:$true] %s560_s17 }
  0x3f   :  { %644 = vmatpush3.bf16.msra.mxu0 %v733_v1  ;;  %664 = vmatpush3.bf16.msra.mxu1 %v741_v4  ;;  %v738_v9 = vld [vmem:[#allocation5 + $0x10] sm:$0xff]   ;;  %v744_v10 = vld [vmem:[#allocation7 + $0x20] sm:$0xff]   ;;  %v739_v11 = vld [vmem:[#allocation5 + $0x8] sm:$0xff]   ;;  %p870_p12 = scmp.lt.s32.totalorder %s561_s17, %s561_s17 }
  0x40   :  { %645 = vmatprep.subr.bf16.mxu0 %v900_v0  ;;  %665 = vmatprep.subr.bf16.mxu1 %v900_v0  ;;  %v745_v12 = vld [vmem:[#allocation7 + $0x18] sm:$0xff]   ;;  %v740_v13 = vld [vmem:[#allocation5] sm:$0xff]   ;;  %v746_v15 = vld [vmem:[#allocation7 + $0x10] sm:$0xff]  }
  0x41   :  { %v100_v14 = vld [vmem:[#allocation2] sm:$0xff]  ;;  %v747_v17 = vld [vmem:[#allocation7 + $0x8] sm:$0xff]   ;;  %v748_v18 = vld [vmem:[#allocation7] sm:$0xff]  }
  0x42   :  { %v101_v16 = vpack.c.bf16 %v100_v14, %v100_v14  ;;  %v749_v19 = vld [vmem:[#allocation8 + $0x38] sm:$0xff]   ;;  %v750_v20 = vld [vmem:[#allocation8 + $0x30] sm:$0xff]   ;;  %v751_v21 = vld [vmem:[#allocation8 + $0x28] sm:$0xff]  }
  0x43   :  { %646 = vmatpush3.bf16.msra.mxu0 %v734_v2  ;;  %666 = vmatpush3.bf16.msra.mxu1 %v742_v6  ;;  %v752_v22 = vld [vmem:[#allocation8 + $0x20] sm:$0xff]   ;;  %v753_v23 = vld [vmem:[#allocation8 + $0x18] sm:$0xff]   ;;  %v754_v24 = vld [vmem:[#allocation8 + $0x10] sm:$0xff]  }
  0x44   :  { %647 = vmatprep.subr.bf16.mxu0 %v900_v0  ;;  %667 = vmatprep.subr.bf16.mxu1 %v900_v0  ;;  %v571_v25 = vld [vmem:[%s1037_s2] ss:$0 sm:$0xff]  ;;  %v755_v33 = vld [vmem:[#allocation8 + $0x8] sm:$0xff]   ;;  %v756_v34 = vld [vmem:[#allocation8] sm:$0xff]  }
  0x45   :  { %v757_v35 = vld [vmem:[#allocation10 + $0x38] sm:$0xff]   ;;  %v758_v36 = vld [vmem:[#allocation10 + $0x30] sm:$0xff]   ;;  %v759_v37 = vld [vmem:[#allocation10 + $0x28] sm:$0xff]  }
  0x46   :  { %v760_v38 = vld [vmem:[#allocation10 + $0x20] sm:$0xff]   ;;  %v761_v39 = vld [vmem:[#allocation10 + $0x18] sm:$0xff]   ;;  %v762_v40 = vld [vmem:[#allocation10 + $0x10] sm:$0xff]  }
  0x47   :  { %648 = vmatpush3.bf16.msra.mxu0 %v735_v3  ;;  %668 = vmatpush3.bf16.msra.mxu1 %v743_v8  ;;  %v580_v41 = vld [vmem:[%s1039_s4] ss:$0 sm:$0xff]  ;;  %v763_v49 = vld [vmem:[#allocation10 + $0x8] sm:$0xff]   ;;  %v764_v50 = vld [vmem:[#allocation10] sm:$0xff]  }
  0x48   :  { %649 = vmatprep.subr.bf16.mxu0 %v900_v0  ;;  %669 = vmatprep.subr.bf16.mxu1 %v900_v0  ;;  %v589_v51 = vld [vmem:[%s1041_s6] ss:$0 sm:$0xff]  ;;  %s865_s6 = scalar_lea.vmem %s561_s17, 128 }
  0x49   :  { %v598_v59 = vld [vmem:[%s1043_s8] ss:$0 sm:$0xff]  ;;  %p866_p11 = scmp.ne.s32.totalorder %s561_s17, %s865_s6  ;;  %p871_p13 = scmp.lt.s32.totalorder %s865_s6, %s865_s6 }
  0x4b   :  { %650 = vmatpush3.bf16.msra.mxu0 %v736_v5  ;;  %670 = vmatpush3.bf16.msra.mxu1 %v744_v10  ;;  %p872_p0 = por %p871_p13, %p870_p12 }
  0x4c   :  { %651 = vmatprep.subr.bf16.mxu0 %v900_v0  ;;  %671 = vmatprep.subr.bf16.mxu1 %v900_v0 }
  0x4d   :  { %p873_p1 = pnand %p872_p0, %p866_p11 }
  0x4f   :  { %652 = vmatpush3.bf16.msra.mxu0 %v737_v7  ;;  %672 = vmatpush3.bf16.msra.mxu1 %v745_v12 }
  0x50   :  { %653 = vmatprep.subr.bf16.mxu0 %v900_v0  ;;  %673 = vmatprep.subr.bf16.mxu1 %v900_v0 }
  0x53   :  { %654 = vmatpush3.bf16.msra.mxu0 %v738_v9  ;;  %674 = vmatpush3.bf16.msra.mxu1 %v746_v15 }
  0x54   :  { %655 = vmatprep.subr.bf16.mxu0 %v900_v0  ;;  %675 = vmatprep.subr.bf16.mxu1 %v900_v0 }
  0x57   :  { %656 = vmatpush3.bf16.msra.mxu0 %v739_v11  ;;  %676 = vmatpush3.bf16.msra.mxu1 %v747_v17 }
  0x58   :  { %657 = vmatprep.subr.bf16.mxu0 %v900_v0  ;;  %677 = vmatprep.subr.bf16.mxu1 %v900_v0 }
  0x5b   :  { %658 = vmatpush3.bf16.msra.mxu0 %v740_v13  ;;  %678 = vmatpush3.bf16.msra.mxu1 %v748_v18 }
  0x5c   :  { %683 = vmatprep.subr.bf16.mxu0 %v900_v0  ;;  %703 = vmatprep.subr.bf16.mxu1 %v900_v0 }
  0x5e   :  { %660 = vmatmul.mubr.bf16.vlgmr.msra.gmra.mxu0 %v101_v16 }
  0x5f   :  { %699 = vmatprep.mubr.msk.bf16.mxu0 %vm901_vm0, %v900_v0  ;;  %684 = vmatpush3.bf16.msra.mxu0 %v749_v19 }
  0x60   :  { %685 = vmatprep.subr.bf16.mxu0 %v900_v0 }
  0x63   :  { %686 = vmatpush3.bf16.msra.mxu0 %v750_v20 }
  0x64   :  { %687 = vmatprep.subr.bf16.mxu0 %v900_v0 }
  0x67   :  { %688 = vmatpush3.bf16.msra.mxu0 %v751_v21 }
  0x68   :  { %689 = vmatprep.subr.bf16.mxu0 %v900_v0 }
  0x6b   :  { %690 = vmatpush3.bf16.msra.mxu0 %v752_v22 }
  0x6c   :  { %691 = vmatprep.subr.bf16.mxu0 %v900_v0 }
  0x6f   :  { %692 = vmatpush3.bf16.msra.mxu0 %v753_v23 }
  0x70   :  { %693 = vmatprep.subr.bf16.mxu0 %v900_v0 }
  0x73   :  { %694 = vmatpush3.bf16.msra.mxu0 %v754_v24 }
  0x74   :  { %695 = vmatprep.subr.bf16.mxu0 %v900_v0 }
  0x77   :  { %696 = vmatpush3.bf16.msra.mxu0 %v755_v33 }
  0x78   :  { %697 = vmatprep.subr.bf16.mxu0 %v900_v0 }
  0x7b   :  { %698 = vmatpush3.bf16.msra.mxu0 %v756_v34 }
 0x11e   :  { %v207_v26 = vpop.f32.mrf.mxu0 }
 0x11f   :  { %v208_v27 = vadd.f32 %v571_v25, %v207_v26 }
 0x120   :  { %v661_v28 = vpop.f32.mrf.mxu0 }
 0x121   :  { %v213_v29 = vmax.f32 %v208_v27, 0.0 }
 0x122   :  { %v210_v30 = vpop.f32.mrf.mxu0 }
 0x123   :  { %v214_v31 = vpack.c.bf16 %v213_v29, %v213_v29 }
 0x124   :  { %v662_v32 = vpop.f32.mrf.mxu0 }
 0x125   :  { %680 = vmatmul.mubr.bf16.vlgmr.msra.gmra.mxu1 %v214_v31 }
 0x126   :  { %719 = vmatprep.mubr.msk.bf16.mxu1 %vm901_vm0, %v900_v0  ;;  %704 = vmatpush3.bf16.msra.mxu1 %v757_v35 }
 0x127   :  { %705 = vmatprep.subr.bf16.mxu1 %v900_v0 }
 0x12a   :  { %706 = vmatpush3.bf16.msra.mxu1 %v758_v36 }
 0x12b   :  { %707 = vmatprep.subr.bf16.mxu1 %v900_v0 }
 0x12e   :  { %708 = vmatpush3.bf16.msra.mxu1 %v759_v37 }
 0x12f   :  { %709 = vmatprep.subr.bf16.mxu1 %v900_v0 }
 0x132   :  { %710 = vmatpush3.bf16.msra.mxu1 %v760_v38 }
 0x133   :  { %711 = vmatprep.subr.bf16.mxu1 %v900_v0 }
 0x136   :  { %712 = vmatpush3.bf16.msra.mxu1 %v761_v39 }
 0x137   :  { %713 = vmatprep.subr.bf16.mxu1 %v900_v0 }
 0x13a   :  { %714 = vmatpush3.bf16.msra.mxu1 %v762_v40 }
 0x13b   :  { %715 = vmatprep.subr.bf16.mxu1 %v900_v0 }
 0x13e   :  { %716 = vmatpush3.bf16.msra.mxu1 %v763_v49 }
 0x13f   :  { %717 = vmatprep.subr.bf16.mxu1 %v900_v0 }
 0x142   :  { %718 = vmatpush3.bf16.msra.mxu1 %v764_v50 }
 0x1e5   :  { %v320_v42 = vpop.f32.mrf.mxu1 }
 0x1e6   :  { %v321_v43 = vadd.f32 %v580_v41, %v320_v42 }
 0x1e7   :  { %v681_v44 = vpop.f32.mrf.mxu1 }
 0x1e8   :  { %v326_v45 = vmax.f32 %v321_v43, 0.0 }
 0x1e9   :  { %v323_v46 = vpop.f32.mrf.mxu1 }
 0x1ea   :  { %v327_v47 = vpack.c.bf16 %v326_v45, %v326_v45 }
 0x1eb   :  { %v682_v48 = vpop.f32.mrf.mxu1 }
 0x1ec   :  { %700 = vmatmul.mubr.bf16.vlgmr.msra.gmra.mxu0 %v327_v47 }
 0x2ac   :  { %v433_v52 = vpop.f32.mrf.mxu0 }
 0x2ad   :  { %v434_v53 = vadd.f32 %v589_v51, %v433_v52 }
 0x2ae   :  { %v701_v54 = vpop.f32.mrf.mxu0 }
 0x2af   :  { %v439_v55 = vmax.f32 %v434_v53, 0.0 }
 0x2b0   :  { %v436_v56 = vpop.f32.mrf.mxu0 }
 0x2b1   :  { %v440_v57 = vpack.c.bf16 %v439_v55, %v439_v55 }
 0x2b2   :  { %v702_v58 = vpop.f32.mrf.mxu0 }
 0x2b3   :  { %720 = vmatmul.mubr.bf16.vlgmr.msra.gmra.mxu1 %v440_v57 }
 0x373   :  { %v546_v60 = vpop.f32.mrf.mxu1 }
 0x374   :  { %v547_v61 = vadd.f32 %v598_v59, %v546_v60 }
 0x375   :  { %v721_v62 = vpop.f32.mrf.mxu1 }
 0x376   :  { %v552_v63 = vmax.f32 %v547_v61, 0.0 }
 0x377   :  { %v549_v0 = vpop.f32.mrf.mxu1 }
 0x378   :  { %553 = vst [vmem:[#allocation11] sm:$0xff] %v552_v63 }
 0x379   :  { %v722_v1 = vpop.f32.mrf.mxu1 }
 0x37a   :  { %876 = shalt.err (!%p873_p1)
}
 0x37b   :  { %563 = dma.vmem_to_hbm [thread:$0]  %s561_s17, 128, %s1044_s9, [#allocation4]  }
 0x37c   :  { %891 = dma.done.wait [#allocation4], 128  }
 0x37d   :  { %892 = vsyncadd [#allocation4], 4294967168 }
 0x37e   :  { %567 = vsyncpa [#allocation3], 1 }
 0x37f   :  { %568 = vsyncpa [#allocation6], 1 }
 0x380   :  { %569 = vsyncpa [#allocation9], 1 }
 0x381   :  { %570 = vsyncpa [#allocation4], 1 }

</bundles_post_ra>
